<compile_context>
chip_gen: v7x
topology: tpu7x:2x2x1
jax: 0.10.0
libtpu: 0.0.40
codegen_flags: <defaults>
</compile_context>

<pallas_src>
import jax
import jax.numpy as jnp
from jax.experimental import pallas as pl
from jax.experimental.pallas import tpu as pltpu


def highway_kernel(x_ref, w_ref, b_ref, o_ref):
    # x_ref: (tm, D) f32, w_ref: (D, 2D) bf16, b_ref: (1, 2D) f32,
    # o_ref: (tm, D) in the caller's dtype.
    D = x_ref.shape[-1]
    xf = x_ref[...].astype(jnp.float32)

    # One wide MXU matmul for both the projection and the gate (bf16 operands,
    # f32 accumulation).
    y = jnp.dot(xf.astype(w_ref.dtype), w_ref[...],
                preferred_element_type=jnp.float32) + b_ref[...]

    proj = jnp.maximum(y[:, :D], 0.0)        # ReLU     (f32, VPU)
    gate = jax.nn.sigmoid(y[:, D:])          # Sigmoid  (f32, exp on EUP)

    # gate*proj + (1-gate)*x  ==  x + gate*(proj - x)
    o_ref[...] = (xf + gate * (proj - xf)).astype(o_ref.dtype)


def highway(x, wp, bp, wg, bg, *, tm=256, mxu_dtype=jnp.bfloat16):
    """Highway forward.

    x : (..., e_word)          activations (feature dim last).
    wp, wg : (e_word, e_word)  projection / gate weights in (in, out) layout
                               (i.e. transpose of torch.nn.Linear.weight).
    bp, bg : (e_word,)         biases.
    """
    orig_shape = x.shape
    D = orig_shape[-1]
    assert D % 128 == 0, "feature dim must be a multiple of 128 (lane width)"

    x2 = x.reshape(-1, D)
    N = x2.shape[0]

    # Clamp the row tile for small inputs (sublane-aligned), then pad to a
    # whole number of tiles.
    tm_eff = min(tm, ((N + 7) // 8) * 8)
    grid_m = pl.cdiv(N, tm_eff)
    Np = grid_m * tm_eff
    if Np != N:
        x2 = jnp.pad(x2, ((0, Np - N), (0, 0)))

    # Fuse the two linear layers into one wide matmul; bf16 weight operands
    # for the MXU.  (In a real model this fusion/cast would be done once at
    # parameter-load time, not per call.)
    w_fused = jnp.concatenate([wp, wg], axis=1).astype(mxu_dtype)      # (D, 2D)
    b_fused = jnp.concatenate([bp, bg]).reshape(1, 2 * D).astype(jnp.float32)

    out_dtype = x.dtype
    cost = pl.CostEstimate(
        flops=2 * Np * D * (2 * D) + 6 * Np * D,
        transcendentals=Np * D,
        bytes_accessed=(x2.size * x2.dtype.itemsize
                        + w_fused.size * w_fused.dtype.itemsize
                        + b_fused.size * b_fused.dtype.itemsize
                        + Np * D * jnp.dtype(out_dtype).itemsize),
    )

    out = pl.pallas_call(
        highway_kernel,
        out_shape=jax.ShapeDtypeStruct((Np, D), out_dtype),
        grid_spec=pltpu.PrefetchScalarGridSpec(
            num_scalar_prefetch=0,
            grid=(grid_m,),
            in_specs=[
                pl.BlockSpec((tm_eff, D), lambda i: (i, 0)),    # x rows
                pl.BlockSpec((D, 2 * D), lambda i: (0, 0)),     # [Wp | Wg]
                pl.BlockSpec((1, 2 * D), lambda i: (0, 0)),     # [bp | bg]
            ],
            out_specs=pl.BlockSpec((tm_eff, D), lambda i: (i, 0)),
        ),
        compiler_params=pltpu.CompilerParams(
            dimension_semantics=("parallel",)),
        cost_estimate=cost,
    )(x2, w_fused, b_fused)

    if Np != N:
        out = out[:N]
    return out.reshape(orig_shape)


def highway_ref(x, wp, bp, wg, bg):
    """Pure-JAX f32 reference (mirrors the PyTorch forward)."""
    proj = jax.nn.relu(x @ wp + bp)
    gate = jax.nn.sigmoid(x @ wg + bg)
    return gate * proj + (1.0 - gate) * x


if __name__ == "__main__":
    e_word = 256
    batch, seq = 2, 8

    key = jax.random.PRNGKey(0)
    kx, kwp, kbp, kwg, kbg = jax.random.split(key, 5)

    # Deterministic synthetic parameters (PyTorch Linear weight is (out, in);
    # we store the transpose (in, out) so the kernel does x @ W directly).
    scale = 1.0 / jnp.sqrt(e_word)
    wp = jax.random.uniform(kwp, (e_word, e_word), jnp.float32, -scale, scale)
    bp = jax.random.uniform(kbp, (e_word,), jnp.float32, -scale, scale)
    wg = jax.random.uniform(kwg, (e_word, e_word), jnp.float32, -scale, scale)
    bg = jax.random.uniform(kbg, (e_word,), jnp.float32, -scale, scale)

    x = jax.random.normal(kx, (batch, seq, e_word), jnp.float32)

    out = highway(x, wp, bp, wg, bg)
    out = jax.block_until_ready(out)

    ref = highway_ref(x, wp, bp, wg, bg)
    assert out.shape == x.shape
    # bf16 MXU operands (f32 accumulation, f32 residual) vs f32 reference.
    assert jnp.allclose(out, ref, atol=3e-2, rtol=3e-2), (
        float(jnp.max(jnp.abs(out - ref))))

    print("KERNEL_OK")
</pallas_src>

<mosaic_0001>
module attributes {stable_mosaic.version = 11 : i64} {
  func.func @highway_kernel(%arg0: i32, %arg1: memref<16x256xf32, #tpu.memory_space<vmem>>, %arg2: memref<256x512xbf16, #tpu.memory_space<vmem>>, %arg3: memref<1x512xf32, #tpu.memory_space<vmem>>, %arg4: memref<16x256xf32, #tpu.memory_space<vmem>>) attributes {dimension_semantics = [#tpu.dimension_semantics<parallel>], iteration_bounds = array<i64: 1>, scalar_prefetch = 0 : i64, scratch_operands = 0 : i64, tpu.core_type = #tpu.core_type<tc>, window_params = [{transform_indices = @transform_0, window_bounds = array<i64: 16, 256>}, {pipeline_mode = #tpu.pipeline_mode<synchronous>, transform_indices = @transform_1, window_bounds = array<i64: 256, 512>}, {pipeline_mode = #tpu.pipeline_mode<synchronous>, transform_indices = @transform_2, window_bounds = array<i64: 1, 512>}, {transform_indices = @transform_3, window_bounds = array<i64: 16, 256>}]} {
    %c0 = arith.constant 0 : index
    %c0_0 = arith.constant 0 : index
    %0 = vector.load %arg1[%c0, %c0_0] : memref<16x256xf32, #tpu.memory_space<vmem>>, vector<16x256xf32>
    %1 = arith.truncf %0 : vector<16x256xf32> to vector<16x256xbf16>
    %c0_1 = arith.constant 0 : index
    %c0_2 = arith.constant 0 : index
    %2 = vector.load %arg2[%c0_1, %c0_2] : memref<256x512xbf16, #tpu.memory_space<vmem>>, vector<256x512xbf16>
    %cst = arith.constant dense<0.000000e+00> : vector<16x512xf32>
    %3 = tpu.matmul %1, %2, %cst {dimension_numbers = #tpu.dot_dimension_numbers<[1], [0], [0], [1], [0, 0, 1, 1], [], []>} : vector<16x256xbf16>, vector<256x512xbf16>, vector<16x512xf32> -> vector<16x512xf32>
    %c0_3 = arith.constant 0 : index
    %c0_4 = arith.constant 0 : index
    %4 = vector.load %arg3[%c0_3, %c0_4] : memref<1x512xf32, #tpu.memory_space<vmem>>, vector<1x512xf32>
    %5 = vector.broadcast %4 : vector<1x512xf32> to vector<16x512xf32>
    %6 = arith.addf %3, %5 : vector<16x512xf32>
    %7 = vector.extract_strided_slice %6 {offsets = [0, 0], sizes = [16, 256], strides = [1, 1]} : vector<16x512xf32> to vector<16x256xf32>
    %cst_5 = arith.constant 0.000000e+00 : f32
    %8 = vector.broadcast %cst_5 : f32 to vector<16x256xf32>
    %9 = arith.maximumf %7, %8 : vector<16x256xf32>
    %10 = vector.extract_strided_slice %6 {offsets = [0, 256], sizes = [16, 256], strides = [1, 1]} : vector<16x512xf32> to vector<16x256xf32>
    %11 = arith.negf %10 : vector<16x256xf32>
    %12 = math.exp %11 : vector<16x256xf32>
    %cst_6 = arith.constant 1.000000e+00 : f32
    %13 = vector.broadcast %cst_6 : f32 to vector<16x256xf32>
    %14 = arith.addf %13, %12 : vector<16x256xf32>
    %15 = arith.divf %13, %14 : vector<16x256xf32>
    %16 = arith.subf %9, %0 : vector<16x256xf32>
    %17 = arith.mulf %15, %16 : vector<16x256xf32>
    %18 = arith.addf %0, %17 : vector<16x256xf32>
    %c0_7 = arith.constant 0 : index
    %c0_8 = arith.constant 0 : index
    %19 = vector.load %arg4[%c0_7, %c0_8] : memref<16x256xf32, #tpu.memory_space<vmem>>, vector<16x256xf32>
    tpu.vector_store %arg4[%c0_7, %c0_8], %18 {strides = array<i32>} : memref<16x256xf32, #tpu.memory_space<vmem>>, vector<16x256xf32>,
    return
  }
  func.func @transform_0(%arg0: i32) -> (i32, i32) {
    %c0_i32 = arith.constant 0 : i32
    %c0_i32_0 = arith.constant 0 : i32
    return %arg0, %c0_i32 : i32, i32
  }
  func.func @transform_1(%arg0: i32) -> (i32, i32) {
    %c0_i32 = arith.constant 0 : i32
    %c0_i32_0 = arith.constant 0 : i32
    %c0_i32_1 = arith.constant 0 : i32
    return %c0_i32, %c0_i32_0 : i32, i32
  }
  func.func @transform_2(%arg0: i32) -> (i32, i32) {
    %c0_i32 = arith.constant 0 : i32
    %c0_i32_0 = arith.constant 0 : i32
    %c0_i32_1 = arith.constant 0 : i32
    return %c0_i32, %c0_i32_0 : i32, i32
  }
  func.func @transform_3(%arg0: i32) -> (i32, i32) {
    %c0_i32 = arith.constant 0 : i32
    %c0_i32_0 = arith.constant 0 : i32
    return %arg0, %c0_i32 : i32, i32
  }
}

</mosaic_0001>

<bundles_post_ra>
// kernel: tpu_custom_call.1
= control target key start
LH: loop header
LB: loop body
LE: loop exit
PB: predicated region body
PF: predicated region fallthrough
CT: control target
= control target key end

     0   :  { %8 = vsyncpa [#allocation3], 0  ;;  %s953_s0 = inlined_call_operand.hbm [shape: f32[16,256], index: 0, kind: input, shape index: {}]   ;;  %s954_s1 = inlined_call_operand.hbm [shape: bf16[256,512], index: 1, kind: input, shape index: {}]   ;;  %s955_s2 = inlined_call_operand.vmem [shape: f32[1,512], index: 2, kind: input, shape index: {}]   ;;  %s956_s3 = inlined_call_operand.hbm [shape: f32[16,256], index: 3, kind: output, shape index: {}]  }
   0x1   :  { %9 = vsyncpa [#allocation6], 0 }
   0x2   :  { %10 = vsyncpa [#allocation4], 0  ;;  %s860_s12 = smov [#allocation2]   ;;  %s788_s16 = scalar_lea.hbm %s953_s0, 512 }
   0x3   :  { %s16_s13 = sshll.u32 %s860_s12, 4  ;;  %p789_p0 = scmp.ne.s32.totalorder %s953_s0, %s788_s16  ;;  %s17_s13 = int_to_ptr.vmem [resolvable:$true] %s16_s13 }
   0x4   :  { %p792_p1 = scmp.lt.u32.totalorder %s788_s16, %s953_s0 }
   0x6   :  { %p794_p2 = pnand %p792_p1, %p789_p0 }
   0x8   :  { %797 = shalt.err (!%p794_p2)
}
   0x9   :  { %s798_s21 = scalar_lea.vmem %s17_s13, 512  ;;  %p803_p4 = scmp.lt.s32.totalorder %s17_s13, %s17_s13 }
   0xa   :  { %p799_p3 = scmp.ne.s32.totalorder %s17_s13, %s798_s21  ;;  %p804_p5 = scmp.lt.s32.totalorder %s798_s21, %s798_s21 }
   0xc   :  { %p805_p6 = por %p804_p5, %p803_p4 }
   0xe   :  { %p806_p7 = pnand %p805_p6, %p799_p3 }
  0x10   :  { %809 = shalt.err (!%p806_p7)
}
  0x11   :  { %s861_s22 = smov 256   ;;  %s862_s23 = smov 16  }
  0x12   :  { %22 = dma.hbm_to_vmem [thread:$0]  %s953_s0, 512, %s17_s13, [#allocation3], %s861_s22, %s861_s22, %s862_s23  }
  0x13   :  { %s863_s26 = smov [#allocation5]   ;;  %s810_s30 = scalar_lea.hbm %s954_s1, 8192 }
  0x14   :  { %s28_s27 = sshll.u32 %s863_s26, 4  ;;  %p811_p8 = scmp.ne.s32.totalorder %s954_s1, %s810_s30  ;;  %s29_s27 = int_to_ptr.vmem [resolvable:$true] %s28_s27 }
  0x15   :  { %p814_p9 = scmp.lt.u32.totalorder %s810_s30, %s954_s1 }
  0x17   :  { %p816_p10 = pnand %p814_p9, %p811_p8 }
  0x19   :  { %819 = shalt.err (!%p816_p10)
}
  0x1a   :  { %s820_s8 = scalar_lea.vmem %s29_s27, 8192  ;;  %p825_p12 = scmp.lt.s32.totalorder %s29_s27, %s29_s27 }
  0x1b   :  { %p821_p11 = scmp.ne.s32.totalorder %s29_s27, %s820_s8  ;;  %p826_p13 = scmp.lt.s32.totalorder %s820_s8, %s820_s8 }
  0x1d   :  { %p827_p0 = por %p826_p13, %p825_p12 }
  0x1f   :  { %p828_p1 = pnand %p827_p0, %p821_p11 }
  0x21   :  { %831 = shalt.err (!%p828_p1)
}
  0x22   :  { %34 = dma.hbm_to_vmem [thread:$0]  %s954_s1, 8192, %s29_s27, [#allocation6], %s861_s22, %s861_s22, %s862_s23  }
  0x23   :  { %854 = dma.done.wait [#allocation3], 512  }
  0x24   :  { %855 = vsyncadd [#allocation3], 4294966784 }
  0x25   :  { %856 = dma.done.wait [#allocation6], 8192  }
  0x26   :  { %857 = vsyncadd [#allocation6], 4294959104  ;;  %v676_v0 = vld [vmem:[#allocation5 + $0xc] ss:$16 sps:$4 sm:$0xff]   ;;  %v678_v1 = vld [vmem:[#allocation5 + $0x8] ss:$16 sps:$4 sm:$0xff]  }
  0x27   :  { %498 = vmatprep.subr.bf16.mxu1 %v676_v0  ;;  %v679_v2 = vld [vmem:[#allocation5 + $0x2c] ss:$16 sps:$4 sm:$0xff]   ;;  %v681_v3 = vld [vmem:[#allocation5 + $0x28] ss:$16 sps:$4 sm:$0xff]   ;;  %v691_v6 = vld [vmem:[#allocation5 + $0x4] ss:$16 sps:$4 sm:$0xff]  }
  0x28   :  { %499 = vmatpush1.bf16.msra.mxu1 %v678_v1  ;;  %v682_v4 = vld [vmem:[#allocation5 + $0x4c] ss:$16 sps:$4 sm:$0xff]   ;;  %v684_v5 = vld [vmem:[#allocation5 + $0x48] ss:$16 sps:$4 sm:$0xff]   ;;  %v693_v7 = vld [vmem:[#allocation5] ss:$16 sps:$4 sm:$0xff]   ;;  %455 = vmatprep.subr.bf16.mxu0 %v691_v6  ;;  %v115_v6 = vlaneseq }
  0x29   :  { %500 = vmatprep.subr.bf16.mxu1 %v679_v2  ;;  %v685_v8 = vld [vmem:[#allocation5 + $0x6c] ss:$16 sps:$4 sm:$0xff]   ;;  %456 = vmatpush1.bf16.msra.mxu0 %v693_v7  ;;  %v697_v9 = vld [vmem:[#allocation5 + $0x24] ss:$16 sps:$4 sm:$0xff]   ;;  %v699_v10 = vld [vmem:[#allocation5 + $0x20] ss:$16 sps:$4 sm:$0xff]  }
  0x2a   :  { %v687_v11 = vld [vmem:[#allocation5 + $0x68] ss:$16 sps:$4 sm:$0xff]   ;;  %v688_v12 = vld [vmem:[#allocation5 + $0x8c] ss:$16 sps:$4 sm:$0xff]   ;;  %457 = vmatprep.subr.bf16.mxu0 %v697_v9  ;;  %v703_v13 = vld [vmem:[#allocation5 + $0x44] ss:$16 sps:$4 sm:$0xff]  }
  0x2b   :  { %v705_v14 = vld [vmem:[#allocation5 + $0x40] ss:$16 sps:$4 sm:$0xff]   ;;  %v690_v15 = vld [vmem:[#allocation5 + $0x88] ss:$16 sps:$4 sm:$0xff]   ;;  %v709_v16 = vld [vmem:[#allocation5 + $0x64] ss:$16 sps:$4 sm:$0xff]  }
  0x2c   :  { %501 = vmatpush1.bf16.msra.mxu1 %v681_v3  ;;  %v694_v17 = vld [vmem:[#allocation5 + $0xac] ss:$16 sps:$4 sm:$0xff]   ;;  %v711_v18 = vld [vmem:[#allocation5 + $0x60] ss:$16 sps:$4 sm:$0xff]   ;;  %v696_v19 = vld [vmem:[#allocation5 + $0xa8] ss:$16 sps:$4 sm:$0xff]  }
  0x2d   :  { %502 = vmatprep.subr.bf16.mxu1 %v682_v4  ;;  %458 = vmatpush1.bf16.msra.mxu0 %v699_v10  ;;  %v715_v20 = vld [vmem:[#allocation5 + $0x84] ss:$16 sps:$4 sm:$0xff]   ;;  %v700_v21 = vld [vmem:[#allocation5 + $0xcc] ss:$16 sps:$4 sm:$0xff]   ;;  %v717_v22 = vld [vmem:[#allocation5 + $0x80] ss:$16 sps:$4 sm:$0xff]  }
  0x2e   :  { %459 = vmatprep.subr.bf16.mxu0 %v703_v13  ;;  %v702_v23 = vld [vmem:[#allocation5 + $0xc8] ss:$16 sps:$4 sm:$0xff]   ;;  %v721_v24 = vld [vmem:[#allocation5 + $0xa4] ss:$16 sps:$4 sm:$0xff]   ;;  %v706_v25 = vld [vmem:[#allocation5 + $0xec] ss:$16 sps:$4 sm:$0xff]  }
  0x2f   :  { %v723_v26 = vld [vmem:[#allocation5 + $0xa0] ss:$16 sps:$4 sm:$0xff]   ;;  %v708_v27 = vld [vmem:[#allocation5 + $0xe8] ss:$16 sps:$4 sm:$0xff]   ;;  %v727_v28 = vld [vmem:[#allocation5 + $0xc4] ss:$16 sps:$4 sm:$0xff]  }
  0x30   :  { %503 = vmatpush1.bf16.msra.mxu1 %v684_v5  ;;  %v712_v29 = vld [vmem:[#allocation5 + $0x10c] ss:$16 sps:$4 sm:$0xff]   ;;  %v729_v30 = vld [vmem:[#allocation5 + $0xc0] ss:$16 sps:$4 sm:$0xff]   ;;  %v714_v31 = vld [vmem:[#allocation5 + $0x108] ss:$16 sps:$4 sm:$0xff]  }
  0x31   :  { %504 = vmatprep.subr.bf16.mxu1 %v685_v8  ;;  %460 = vmatpush1.bf16.msra.mxu0 %v705_v14  ;;  %v733_v32 = vld [vmem:[#allocation5 + $0xe4] ss:$16 sps:$4 sm:$0xff]   ;;  %v718_v33 = vld [vmem:[#allocation5 + $0x12c] ss:$16 sps:$4 sm:$0xff]   ;;  %v735_v34 = vld [vmem:[#allocation5 + $0xe0] ss:$16 sps:$4 sm:$0xff]  }
  0x32   :  { %461 = vmatprep.subr.bf16.mxu0 %v709_v16  ;;  %v720_v35 = vld [vmem:[#allocation5 + $0x128] ss:$16 sps:$4 sm:$0xff]   ;;  %v739_v36 = vld [vmem:[#allocation5 + $0x104] ss:$16 sps:$4 sm:$0xff]   ;;  %v724_v37 = vld [vmem:[#allocation5 + $0x14c] ss:$16 sps:$4 sm:$0xff]  }
  0x33   :  { %v915_v38 = vld [vmem:[#allocation2 + $0x8] sm:$0xff]  ;;  %v917_v39 = vld [vmem:[#allocation2 + $0x18] sm:$0xff]  ;;  %v741_v40 = vld [vmem:[#allocation5 + $0x100] ss:$16 sps:$4 sm:$0xff]   ;;  %v116_v7 = vshrl.u32 %v115_v6, 7 }
  0x34   :  { %505 = vmatpush1.bf16.msra.mxu1 %v687_v11  ;;  %v48_v41 = vpack.c.bf16 %v917_v39, %v915_v38  ;;  %v726_v42 = vld [vmem:[#allocation5 + $0x148] ss:$16 sps:$4 sm:$0xff]   ;;  %v745_v43 = vld [vmem:[#allocation5 + $0x124] ss:$16 sps:$4 sm:$0xff]   ;;  %v730_v44 = vld [vmem:[#allocation5 + $0x16c] ss:$16 sps:$4 sm:$0xff]  }
  0x35   :  { %506 = vmatprep.subr.bf16.mxu1 %v688_v12  ;;  %462 = vmatpush1.bf16.msra.mxu0 %v711_v18  ;;  %v747_v45 = vld [vmem:[#allocation5 + $0x120] ss:$16 sps:$4 sm:$0xff]   ;;  %v732_v46 = vld [vmem:[#allocation5 + $0x168] ss:$16 sps:$4 sm:$0xff]   ;;  %v751_v47 = vld [vmem:[#allocation5 + $0x144] ss:$16 sps:$4 sm:$0xff]  }
  0x36   :  { %463 = vmatprep.subr.bf16.mxu0 %v715_v20  ;;  %530 = vmatprep.mubr.bf16.mxu1 %v48_v41  ;;  %v736_v48 = vld [vmem:[#allocation5 + $0x18c] ss:$16 sps:$4 sm:$0xff]   ;;  %v753_v49 = vld [vmem:[#allocation5 + $0x140] ss:$16 sps:$4 sm:$0xff]   ;;  %v738_v50 = vld [vmem:[#allocation5 + $0x188] ss:$16 sps:$4 sm:$0xff]  }
  0x37   :  { %487 = vmatprep.mubr.bf16.mxu0 %v48_v41  ;;  %v757_v51 = vld [vmem:[#allocation5 + $0x164] ss:$16 sps:$4 sm:$0xff]   ;;  %v742_v52 = vld [vmem:[#allocation5 + $0x1ac] ss:$16 sps:$4 sm:$0xff]   ;;  %v759_v53 = vld [vmem:[#allocation5 + $0x160] ss:$16 sps:$4 sm:$0xff]  }
  0x38   :  { %507 = vmatpush1.bf16.msra.mxu1 %v690_v15  ;;  %v744_v54 = vld [vmem:[#allocation5 + $0x1a8] ss:$16 sps:$4 sm:$0xff]   ;;  %v760_v55 = vld [vmem:[#allocation5 + $0x184] ss:$16 sps:$4 sm:$0xff]   ;;  %v748_v56 = vld [vmem:[#allocation5 + $0x1cc] ss:$16 sps:$4 sm:$0xff]  }
  0x39   :  { %508 = vmatprep.subr.bf16.mxu1 %v694_v17  ;;  %464 = vmatpush1.bf16.msra.mxu0 %v717_v22  ;;  %v762_v57 = vld [vmem:[#allocation5 + $0x180] ss:$16 sps:$4 sm:$0xff]   ;;  %v750_v58 = vld [vmem:[#allocation5 + $0x1c8] ss:$16 sps:$4 sm:$0xff]   ;;  %v763_v59 = vld [vmem:[#allocation5 + $0x1a4] ss:$16 sps:$4 sm:$0xff]  }
  0x3a   :  { %465 = vmatprep.subr.bf16.mxu0 %v721_v24  ;;  %v754_v60 = vld [vmem:[#allocation5 + $0x1ec] ss:$16 sps:$4 sm:$0xff]   ;;  %v756_v61 = vld [vmem:[#allocation5 + $0x1e8] ss:$16 sps:$4 sm:$0xff]   ;;  %v765_v62 = vld [vmem:[#allocation5 + $0x1a0] ss:$16 sps:$4 sm:$0xff]  }
  0x3b   :  { %v921_v63 = vld [vmem:[#allocation2] sm:$0xff]  ;;  %v923_v0 = vld [vmem:[#allocation2 + $0x10] sm:$0xff]  ;;  %v125_v8 = vsub.s32 2, %v116_v7  ;;  %v129_v10 = vsub.s32 3, %v116_v7 }
  0x3c   :  { %509 = vmatpush1.bf16.msra.mxu1 %v696_v19  ;;  %v766_v1 = vld [vmem:[#allocation5 + $0x1c4] ss:$16 sps:$4 sm:$0xff]   ;;  %v47_v2 = vpack.c.bf16 %v923_v0, %v921_v63  ;;  %v768_v3 = vld [vmem:[#allocation5 + $0x1c0] ss:$16 sps:$4 sm:$0xff]  }
  0x3d   :  { %510 = vmatprep.subr.bf16.mxu1 %v700_v21  ;;  %466 = vmatpush1.bf16.msra.mxu0 %v723_v26  ;;  %v769_v4 = vld [vmem:[#allocation5 + $0x1e4] ss:$16 sps:$4 sm:$0xff]   ;;  %v771_v5 = vld [vmem:[#allocation5 + $0x1e0] ss:$16 sps:$4 sm:$0xff]  }
  0x3e   :  { %467 = vmatprep.subr.bf16.mxu0 %v727_v28  ;;  %v113_v9 = vld [vmem:[%s955_s2] sm:$0xf]  ;;  %s864_s2 = smov [#allocation7]  }
  0x3f   :  { %v126_v11 = vrot.slane %v113_v9, %v125_v8  ;;  %v130_v12 = vrot.slane %v113_v9, %v129_v10  ;;  %s590_s11 = sshll.u32 %s864_s2, 4  ;;  %s591_s11 = int_to_ptr.vmem [resolvable:$true] %s590_s11 }
  0x40   :  { %511 = vmatpush1.bf16.msra.mxu1 %v702_v23  ;;  %s832_s12 = scalar_lea.vmem %s591_s11, 512  ;;  %p837_p3 = scmp.lt.s32.totalorder %s591_s11, %s591_s11 }
  0x41   :  { %512 = vmatprep.subr.bf16.mxu1 %v706_v25  ;;  %468 = vmatpush1.bf16.msra.mxu0 %v729_v30  ;;  %p833_p2 = scmp.ne.s32.totalorder %s591_s11, %s832_s12  ;;  %p838_p4 = scmp.lt.s32.totalorder %s832_s12, %s832_s12 }
  0x42   :  { %469 = vmatprep.subr.bf16.mxu0 %v733_v32 }
  0x43   :  { %p839_p5 = por %p838_p4, %p837_p3 }
  0x44   :  { %513 = vmatpush1.bf16.msra.mxu1 %v708_v27  ;;  %v117_v27 = vsub.s32 0, %v116_v7 }
  0x45   :  { %514 = vmatprep.subr.bf16.mxu1 %v712_v29  ;;  %470 = vmatpush1.bf16.msra.mxu0 %v735_v34  ;;  %v121_v29 = vsub.s32 1, %v116_v7  ;;  %p840_p6 = pnand %p839_p5, %p833_p2 }
  0x46   :  { %471 = vmatprep.subr.bf16.mxu0 %v739_v36 }
  0x47   :  { %v122_v32 = vrot.slane %v113_v9, %v121_v29 }
  0x48   :  { %515 = vmatpush1.bf16.msra.mxu1 %v714_v31  ;;  %v118_v31 = vrot.slane %v113_v9, %v117_v27 }
  0x49   :  { %516 = vmatprep.subr.bf16.mxu1 %v718_v33  ;;  %472 = vmatpush1.bf16.msra.mxu0 %v741_v40 }
  0x4a   :  { %473 = vmatprep.subr.bf16.mxu0 %v745_v43 }
  0x4c   :  { %517 = vmatpush1.bf16.msra.mxu1 %v720_v35 }
  0x4d   :  { %518 = vmatprep.subr.bf16.mxu1 %v724_v37  ;;  %474 = vmatpush1.bf16.msra.mxu0 %v747_v45 }
  0x4e   :  { %475 = vmatprep.subr.bf16.mxu0 %v751_v47 }
  0x50   :  { %519 = vmatpush1.bf16.msra.mxu1 %v726_v42 }
  0x51   :  { %520 = vmatprep.subr.bf16.mxu1 %v730_v44  ;;  %476 = vmatpush1.bf16.msra.mxu0 %v753_v49 }
  0x52   :  { %477 = vmatprep.subr.bf16.mxu0 %v757_v51 }
  0x54   :  { %521 = vmatpush1.bf16.msra.mxu1 %v732_v46 }
  0x55   :  { %522 = vmatprep.subr.bf16.mxu1 %v736_v48  ;;  %478 = vmatpush1.bf16.msra.mxu0 %v759_v53 }
  0x56   :  { %479 = vmatprep.subr.bf16.mxu0 %v760_v55 }
  0x58   :  { %523 = vmatpush1.bf16.msra.mxu1 %v738_v50 }
  0x59   :  { %524 = vmatprep.subr.bf16.mxu1 %v742_v52  ;;  %480 = vmatpush1.bf16.msra.mxu0 %v762_v57 }
  0x5a   :  { %481 = vmatprep.subr.bf16.mxu0 %v763_v59 }
  0x5c   :  { %525 = vmatpush1.bf16.msra.mxu1 %v744_v54 }
  0x5d   :  { %526 = vmatprep.subr.bf16.mxu1 %v748_v56  ;;  %482 = vmatpush1.bf16.msra.mxu0 %v765_v62 }
  0x5e   :  { %483 = vmatprep.subr.bf16.mxu0 %v766_v1 }
  0x60   :  { %527 = vmatpush1.bf16.msra.mxu1 %v750_v58 }
  0x61   :  { %528 = vmatprep.subr.bf16.mxu1 %v754_v60  ;;  %484 = vmatpush1.bf16.msra.mxu0 %v768_v3 }
  0x62   :  { %485 = vmatprep.subr.bf16.mxu0 %v769_v4 }
  0x64   :  { %529 = vmatpush1.bf16.msra.mxu1 %v756_v61 }
  0x65   :  { %486 = vmatpush1.bf16.msra.mxu0 %v771_v5 }
  0x67   :  { %531 = vmatmul.mubr.bf16.vlgmr.msra.gmra.mrb[0].mxu1 %v47_v2 }
  0x68   :  { %488 = vmatmul.mubr.bf16.vlgmr.msra.gmra.mrb[0].mxu0 %v47_v2 }
 0x13a   :  { %v532_v13 = vpop.f32.mrb[0].mxu1 }
 0x13b   :  { %v533_v14 = vadd.f32 %v532_v13, %v126_v11  ;;  %v534_v15 = vpop.f32.mrb[1].mxu1  ;;  %v489_v25 = vpop.f32.mrb[0].mxu0 }
 0x13c   :  { %v535_v16 = vadd.f32 %v534_v15, %v130_v12  ;;  %v536_v17 = vpop.f32.mrb[2].mxu1  ;;  %v491_v26 = vpop.f32.mrb[1].mxu0  ;;  %v490_v40 = vadd.f32 %v489_v25, %v118_v31 }
 0x13d   :  { %v667_v18 = vmul.f32 -1.442695, %v533_v14  ;;  %v537_v19 = vadd.f32 %v536_v17, %v126_v11  ;;  %v538_v20 = vpop.f32.mrb[3].mxu1  ;;  %v493_v28 = vpop.f32.mrb[2].mxu0  ;;  %v492_v43 = vadd.f32 %v491_v26, %v122_v32 }
 0x13e   :  { %v668_v21 = vmul.f32 -1.442695, %v535_v16  ;;  %v539_v22 = vadd.f32 %v538_v20, %v130_v12  ;;  %v495_v30 = vpop.f32.mrb[3].mxu0  ;;  %v541_v45 = vmax.f32 %v490_v40, 0.0  ;;  %v494_v46 = vadd.f32 %v493_v28, %v118_v31 }
 0x13f   :  { %772 = vpow2.f32 %v667_v18  ;;  %v669_v23 = vmul.f32 -1.442695, %v537_v19  ;;  %v542_v47 = vmax.f32 %v492_v43, 0.0  ;;  %v496_v48 = vadd.f32 %v495_v30, %v122_v32 }
 0x140   :  { %774 = vpow2.f32 %v668_v21  ;;  %v670_v24 = vmul.f32 -1.442695, %v539_v22  ;;  %v569_v49 = vsub.f32 %v541_v45, %v921_v63  ;;  %v543_v50 = vmax.f32 %v494_v46, 0.0 }
 0x141   :  { %776 = vpow2.f32 %v669_v23  ;;  %v570_v51 = vsub.f32 %v542_v47, %v915_v38  ;;  %v544_v52 = vmax.f32 %v496_v48, 0.0 }
 0x142   :  { %778 = vpow2.f32 %v670_v24  ;;  %v571_v56 = vsub.f32 %v543_v50, %v923_v0 }
 0x143   :  { %v572_v59 = vsub.f32 %v544_v52, %v917_v39 }
 0x149   :  { %v773_v33 = vpop.eup %772 }
 0x14a   :  { %v775_v34 = vpop.eup %774  ;;  %v557_v35 = vadd.f32 1.0, %v773_v33 }
 0x14b   :  { %v777_v36 = vpop.eup %776  ;;  %v558_v37 = vadd.f32 1.0, %v775_v34 }
 0x14c   :  { %v779_v41 = vpop.eup %778  ;;  %780 = vrcp.f32 %v557_v35  ;;  %v559_v42 = vadd.f32 1.0, %v777_v36 }
 0x14d   :  { %782 = vrcp.f32 %v558_v37  ;;  %v560_v44 = vadd.f32 1.0, %v779_v41 }
 0x14e   :  { %784 = vrcp.f32 %v559_v42 }
 0x14f   :  { %786 = vrcp.f32 %v560_v44 }
 0x156   :  { %v781_v53 = vpop.eup %780 }
 0x157   :  { %v783_v54 = vpop.eup %782  ;;  %v573_v55 = vmul.f32 %v781_v53, %v569_v49 }
 0x158   :  { %v785_v57 = vpop.eup %784  ;;  %v574_v58 = vmul.f32 %v783_v54, %v570_v51 }
 0x159   :  { %v787_v60 = vpop.eup %786  ;;  %v577_v61 = vadd.f32 %v573_v55, %v921_v63  ;;  %v575_v62 = vmul.f32 %v785_v57, %v571_v56 }
 0x15a   :  { %v578_v1 = vadd.f32 %v574_v58, %v915_v38  ;;  %v576_v2 = vmul.f32 %v787_v60, %v572_v59 }
 0x15b   :  { %581 = vst [vmem:[#allocation7] sm:$0xff] %v577_v61  ;;  %v579_v3 = vadd.f32 %v575_v62, %v923_v0 }
 0x15c   :  { %582 = vst [vmem:[#allocation7 + $0x8] sm:$0xff] %v578_v1  ;;  %v580_v4 = vadd.f32 %v576_v2, %v917_v39 }
 0x15d   :  { %583 = vst [vmem:[#allocation7 + $0x10] sm:$0xff] %v579_v3 }
 0x15e   :  { %584 = vst [vmem:[#allocation7 + $0x18] sm:$0xff] %v580_v4 }
 0x15f   :  { %843 = shalt.err (!%p840_p6)
}
 0x160   :  { %s844_s15 = scalar_lea.hbm %s956_s3, 512 }
 0x161   :  { %p845_p7 = scmp.ne.s32.totalorder %s956_s3, %s844_s15  ;;  %p848_p8 = scmp.lt.u32.totalorder %s844_s15, %s956_s3 }
 0x163   :  { %p850_p9 = pnand %p848_p8, %p845_p7 }
 0x165   :  { %853 = shalt.err (!%p850_p9)
}
 0x166   :  { %596 = dma.vmem_to_hbm [thread:$0]  %s591_s11, 512, %s956_s3, [#allocation4], %s861_s22, %s861_s22, %s862_s23  }
 0x167   :  { %858 = dma.done.wait [#allocation4], 512  }
 0x168   :  { %859 = vsyncadd [#allocation4], 4294966784 }
 0x169   :  { %600 = vsyncpa [#allocation3], 1 }
 0x16a   :  { %601 = vsyncpa [#allocation6], 1 }
 0x16b   :  { %602 = vsyncpa [#allocation4], 1 }

</bundles_post_ra>
